<compile_context>
chip_gen: v5e
topology: v5e:2x2
jax: 0.10.0
libtpu: 0.0.40
codegen_flags: <defaults>
</compile_context>

<pallas_src>
import math
import functools
from itertools import permutations

import jax
import jax.numpy as jnp
from jax.experimental import pallas as pl
from jax.experimental.pallas import tpu as pltpu


def _mspe_kernel(pred_ref, tgt_ref, o_ref, *, num_sources, perm_list):
    """pred_ref/tgt_ref: (M, TR, 128) f32 dense tiles. o_ref: (1, 128) f32 partials."""
    half_pi = jnp.float32(math.pi / 2.0)
    pi = jnp.float32(math.pi)
    inv_pi = jnp.float32(1.0 / math.pi)
    inv_m = jnp.float32(1.0 / num_sources)

    num_perms = len(perm_list)
    perm_sums = [None] * num_perms

    # Stream one target row m at a time; accumulate directly into the P = M!
    # permutation accumulators.  Keeps ~P + M dense tiles live (no M*M e2
    # materialization), which stays spill-free at large TR.
    for m in range(num_sources):
        t_row = tgt_ref[m]                            # (TR, 128) dense tile
        for k in range(num_sources):
            # error wrapped into [-pi/2, pi/2): ((p - t + pi/2) mod pi) - pi/2
            d = pred_ref[k] - t_row + half_pi
            e = d - pi * jnp.floor(d * inv_pi) - half_pi
            e2 = e * e
            for p_idx, p in enumerate(perm_list):
                if p[m] == k:
                    perm_sums[p_idx] = (
                        e2 if perm_sums[p_idx] is None else perm_sums[p_idx] + e2)

    # Min over the (compile-time) permutations -> per-sample MSPE.
    min_mspe = perm_sums[0]
    for p_idx in range(1, num_perms):
        min_mspe = jnp.minimum(min_mspe, perm_sums[p_idx])
    min_mspe = min_mspe * inv_m                       # (TR, 128)

    # Sublane (XLU) reduce to a lane-dense (1, 128) per-tile partial sum.
    o_ref[...] = jnp.sum(min_mspe, axis=0, keepdims=True)


def mspe_loss(doa_predictions: jax.Array, doa: jax.Array) -> jax.Array:
    """MSPE loss: sum over batch of min-over-permutations mean-square periodic error."""
    B, M = doa_predictions.shape
    assert doa.shape == (B, M)

    perm_list = tuple(permutations(range(M)))  # compile-time permutation table

    LANE = 128
    SUB = 8
    # Sublane-dense tiling: batch -> (R_pad sublane-rows) x (128 lanes).
    R = pl.cdiv(B, LANE)                        # 128-sample rows needed
    TR = min(512, pl.cdiv(R, SUB) * SUB)        # tile rows (multiple of 8), <= 512
    R_pad = pl.cdiv(R, TR) * TR
    num_tiles = R_pad // TR
    B_pad = R_pad * LANE

    def relayout(x):
        # Single fused pad + transpose + reshape: (B, M) -> (M, R_pad, 128).
        x = jnp.pad(x.astype(jnp.float32).T, ((0, 0), (0, B_pad - B)))
        return x.reshape(M, R_pad, LANE)

    pred_t = relayout(doa_predictions)
    tgt_t = relayout(doa)

    kernel = functools.partial(_mspe_kernel, num_sources=M, perm_list=perm_list)

    partials = pl.pallas_call(
        kernel,
        out_shape=jax.ShapeDtypeStruct((1, num_tiles * LANE), jnp.float32),
        grid_spec=pltpu.PrefetchScalarGridSpec(
            num_scalar_prefetch=0,
            grid=(num_tiles,),
            in_specs=[
                pl.BlockSpec((M, TR, LANE), lambda i: (0, i, 0)),
                pl.BlockSpec((M, TR, LANE), lambda i: (0, i, 0)),
            ],
            out_specs=pl.BlockSpec((1, LANE), lambda i: (0, i)),  # lane-dense partials
        ),
        compiler_params=pltpu.CompilerParams(
            dimension_semantics=("parallel",)),     # independent batch tiles
    )(pred_t, tgt_t)

    # Tiny final reduction in plain JAX; zero-padding contributes exactly 0.
    return jnp.sum(partials)


def mspe_loss_ref(doa_predictions: jax.Array, doa: jax.Array) -> jax.Array:
    """Pure-JAX reference mirroring the PyTorch forward."""
    B, M = doa_predictions.shape
    perm_idx = jnp.asarray(list(permutations(range(M))), dtype=jnp.int32)
    pp = doa_predictions.astype(jnp.float32)[:, perm_idx]             # (B, P, M)
    err = jnp.mod(pp - doa[:, None, :].astype(jnp.float32) + jnp.pi / 2,
                  jnp.pi) - jnp.pi / 2
    mspe = jnp.sum(err * err, axis=-1) / M                            # (B, P)
    return jnp.sum(jnp.min(mspe, axis=-1))


if __name__ == "__main__":
    key = jax.random.PRNGKey(0)

    # Small shape implied by the module: (batch_size, num_sources) angles in radians.
    batch_size, num_sources = 2, 3
    k1, k2 = jax.random.split(key)
    doa_predictions = jax.random.uniform(
        k1, (batch_size, num_sources), jnp.float32,
        minval=-math.pi / 2, maxval=math.pi / 2)
    doa = jax.random.uniform(
        k2, (batch_size, num_sources), jnp.float32,
        minval=-math.pi / 2, maxval=math.pi / 2)

    loss = mspe_loss(doa_predictions, doa)
    jax.block_until_ready(loss)
    ref = mspe_loss_ref(doa_predictions, doa)
    assert jnp.allclose(loss, ref, atol=1e-5, rtol=1e-5), (loss, ref)

    # Larger batch: exercises sublane padding + multi-row tiles.
    k3, k4 = jax.random.split(jax.random.PRNGKey(1))
    B2 = 1500
    preds2 = jax.random.uniform(k3, (B2, num_sources), jnp.float32,
                                minval=-math.pi / 2, maxval=math.pi / 2)
    doa2 = jax.random.uniform(k4, (B2, num_sources), jnp.float32,
                              minval=-math.pi / 2, maxval=math.pi / 2)
    loss2 = mspe_loss(preds2, doa2)
    jax.block_until_ready(loss2)
    ref2 = mspe_loss_ref(preds2, doa2)
    assert jnp.allclose(loss2, ref2, atol=1e-3, rtol=1e-5), (loss2, ref2)

    print("KERNEL_OK")
</pallas_src>

<mosaic_0001>
module attributes {stable_mosaic.version = 11 : i64} {
  func.func @_mspe_kernel(%arg0: i32, %arg1: memref<3x8x128xf32, #tpu.memory_space<vmem>>, %arg2: memref<3x8x128xf32, #tpu.memory_space<vmem>>, %arg3: memref<1x128xf32, #tpu.memory_space<vmem>>) attributes {dimension_semantics = [#tpu.dimension_semantics<parallel>], iteration_bounds = array<i64: 1>, scalar_prefetch = 0 : i64, scratch_operands = 0 : i64, tpu.core_type = #tpu.core_type<tc>, window_params = [{transform_indices = @transform_0, window_bounds = array<i64: 3, 8, 128>}, {transform_indices = @transform_1, window_bounds = array<i64: 3, 8, 128>}, {transform_indices = @transform_2, window_bounds = array<i64: 1, 128>}]} {
    %c0 = arith.constant 0 : index
    %c0_0 = arith.constant 0 : index
    %c0_1 = arith.constant 0 : index
    %0 = vector.load %arg2[%c0, %c0_0, %c0_1] : memref<3x8x128xf32, #tpu.memory_space<vmem>>, vector<1x8x128xf32>
    %1 = vector.shape_cast %0 : vector<1x8x128xf32> to vector<8x128xf32>
    %c0_2 = arith.constant 0 : index
    %c0_3 = arith.constant 0 : index
    %c0_4 = arith.constant 0 : index
    %2 = vector.load %arg1[%c0_2, %c0_3, %c0_4] : memref<3x8x128xf32, #tpu.memory_space<vmem>>, vector<1x8x128xf32>
    %3 = vector.shape_cast %2 : vector<1x8x128xf32> to vector<8x128xf32>
    %4 = arith.subf %3, %1 : vector<8x128xf32>
    %cst = arith.constant 1.57079637 : f32
    %5 = vector.broadcast %cst : f32 to vector<8x128xf32>
    %6 = arith.addf %4, %5 : vector<8x128xf32>
    %cst_5 = arith.constant 0.318309873 : f32
    %7 = vector.broadcast %cst_5 : f32 to vector<8x128xf32>
    %8 = arith.mulf %6, %7 : vector<8x128xf32>
    %9 = math.floor %8 : vector<8x128xf32>
    %cst_6 = arith.constant 3.14159274 : f32
    %10 = vector.broadcast %cst_6 : f32 to vector<8x128xf32>
    %11 = arith.mulf %10, %9 : vector<8x128xf32>
    %12 = arith.subf %6, %11 : vector<8x128xf32>
    %cst_7 = arith.constant 1.57079637 : f32
    %13 = vector.broadcast %cst_7 : f32 to vector<8x128xf32>
    %14 = arith.subf %12, %13 : vector<8x128xf32>
    %15 = arith.mulf %14, %14 : vector<8x128xf32>
    %c1 = arith.constant 1 : index
    %c0_8 = arith.constant 0 : index
    %c0_9 = arith.constant 0 : index
    %16 = vector.load %arg1[%c1, %c0_8, %c0_9] : memref<3x8x128xf32, #tpu.memory_space<vmem>>, vector<1x8x128xf32>
    %17 = vector.shape_cast %16 : vector<1x8x128xf32> to vector<8x128xf32>
    %18 = arith.subf %17, %1 : vector<8x128xf32>
    %cst_10 = arith.constant 1.57079637 : f32
    %19 = vector.broadcast %cst_10 : f32 to vector<8x128xf32>
    %20 = arith.addf %18, %19 : vector<8x128xf32>
    %cst_11 = arith.constant 0.318309873 : f32
    %21 = vector.broadcast %cst_11 : f32 to vector<8x128xf32>
    %22 = arith.mulf %20, %21 : vector<8x128xf32>
    %23 = math.floor %22 : vector<8x128xf32>
    %cst_12 = arith.constant 3.14159274 : f32
    %24 = vector.broadcast %cst_12 : f32 to vector<8x128xf32>
    %25 = arith.mulf %24, %23 : vector<8x128xf32>
    %26 = arith.subf %20, %25 : vector<8x128xf32>
    %cst_13 = arith.constant 1.57079637 : f32
    %27 = vector.broadcast %cst_13 : f32 to vector<8x128xf32>
    %28 = arith.subf %26, %27 : vector<8x128xf32>
    %29 = arith.mulf %28, %28 : vector<8x128xf32>
    %c2 = arith.constant 2 : index
    %c0_14 = arith.constant 0 : index
    %c0_15 = arith.constant 0 : index
    %30 = vector.load %arg1[%c2, %c0_14, %c0_15] : memref<3x8x128xf32, #tpu.memory_space<vmem>>, vector<1x8x128xf32>
    %31 = vector.shape_cast %30 : vector<1x8x128xf32> to vector<8x128xf32>
    %32 = arith.subf %31, %1 : vector<8x128xf32>
    %cst_16 = arith.constant 1.57079637 : f32
    %33 = vector.broadcast %cst_16 : f32 to vector<8x128xf32>
    %34 = arith.addf %32, %33 : vector<8x128xf32>
    %cst_17 = arith.constant 0.318309873 : f32
    %35 = vector.broadcast %cst_17 : f32 to vector<8x128xf32>
    %36 = arith.mulf %34, %35 : vector<8x128xf32>
    %37 = math.floor %36 : vector<8x128xf32>
    %cst_18 = arith.constant 3.14159274 : f32
    %38 = vector.broadcast %cst_18 : f32 to vector<8x128xf32>
    %39 = arith.mulf %38, %37 : vector<8x128xf32>
    %40 = arith.subf %34, %39 : vector<8x128xf32>
    %cst_19 = arith.constant 1.57079637 : f32
    %41 = vector.broadcast %cst_19 : f32 to vector<8x128xf32>
    %42 = arith.subf %40, %41 : vector<8x128xf32>
    %43 = arith.mulf %42, %42 : vector<8x128xf32>
    %c1_20 = arith.constant 1 : index
    %c0_21 = arith.constant 0 : index
    %c0_22 = arith.constant 0 : index
    %44 = vector.load %arg2[%c1_20, %c0_21, %c0_22] : memref<3x8x128xf32, #tpu.memory_space<vmem>>, vector<1x8x128xf32>
    %45 = vector.shape_cast %44 : vector<1x8x128xf32> to vector<8x128xf32>
    %c0_23 = arith.constant 0 : index
    %c0_24 = arith.constant 0 : index
    %c0_25 = arith.constant 0 : index
    %46 = vector.load %arg1[%c0_23, %c0_24, %c0_25] : memref<3x8x128xf32, #tpu.memory_space<vmem>>, vector<1x8x128xf32>
    %47 = vector.shape_cast %46 : vector<1x8x128xf32> to vector<8x128xf32>
    %48 = arith.subf %47, %45 : vector<8x128xf32>
    %cst_26 = arith.constant 1.57079637 : f32
    %49 = vector.broadcast %cst_26 : f32 to vector<8x128xf32>
    %50 = arith.addf %48, %49 : vector<8x128xf32>
    %cst_27 = arith.constant 0.318309873 : f32
    %51 = vector.broadcast %cst_27 : f32 to vector<8x128xf32>
    %52 = arith.mulf %50, %51 : vector<8x128xf32>
    %53 = math.floor %52 : vector<8x128xf32>
    %cst_28 = arith.constant 3.14159274 : f32
    %54 = vector.broadcast %cst_28 : f32 to vector<8x128xf32>
    %55 = arith.mulf %54, %53 : vector<8x128xf32>
    %56 = arith.subf %50, %55 : vector<8x128xf32>
    %cst_29 = arith.constant 1.57079637 : f32
    %57 = vector.broadcast %cst_29 : f32 to vector<8x128xf32>
    %58 = arith.subf %56, %57 : vector<8x128xf32>
    %59 = arith.mulf %58, %58 : vector<8x128xf32>
    %60 = arith.addf %29, %59 : vector<8x128xf32>
    %61 = arith.addf %43, %59 : vector<8x128xf32>
    %c1_30 = arith.constant 1 : index
    %c0_31 = arith.constant 0 : index
    %c0_32 = arith.constant 0 : index
    %62 = vector.load %arg1[%c1_30, %c0_31, %c0_32] : memref<3x8x128xf32, #tpu.memory_space<vmem>>, vector<1x8x128xf32>
    %63 = vector.shape_cast %62 : vector<1x8x128xf32> to vector<8x128xf32>
    %64 = arith.subf %63, %45 : vector<8x128xf32>
    %cst_33 = arith.constant 1.57079637 : f32
    %65 = vector.broadcast %cst_33 : f32 to vector<8x128xf32>
    %66 = arith.addf %64, %65 : vector<8x128xf32>
    %cst_34 = arith.constant 0.318309873 : f32
    %67 = vector.broadcast %cst_34 : f32 to vector<8x128xf32>
    %68 = arith.mulf %66, %67 : vector<8x128xf32>
    %69 = math.floor %68 : vector<8x128xf32>
    %cst_35 = arith.constant 3.14159274 : f32
    %70 = vector.broadcast %cst_35 : f32 to vector<8x128xf32>
    %71 = arith.mulf %70, %69 : vector<8x128xf32>
    %72 = arith.subf %66, %71 : vector<8x128xf32>
    %cst_36 = arith.constant 1.57079637 : f32
    %73 = vector.broadcast %cst_36 : f32 to vector<8x128xf32>
    %74 = arith.subf %72, %73 : vector<8x128xf32>
    %75 = arith.mulf %74, %74 : vector<8x128xf32>
    %76 = arith.addf %15, %75 : vector<8x128xf32>
    %77 = arith.addf %43, %75 : vector<8x128xf32>
    %c2_37 = arith.constant 2 : index
    %c0_38 = arith.constant 0 : index
    %c0_39 = arith.constant 0 : index
    %78 = vector.load %arg1[%c2_37, %c0_38, %c0_39] : memref<3x8x128xf32, #tpu.memory_space<vmem>>, vector<1x8x128xf32>
    %79 = vector.shape_cast %78 : vector<1x8x128xf32> to vector<8x128xf32>
    %80 = arith.subf %79, %45 : vector<8x128xf32>
    %cst_40 = arith.constant 1.57079637 : f32
    %81 = vector.broadcast %cst_40 : f32 to vector<8x128xf32>
    %82 = arith.addf %80, %81 : vector<8x128xf32>
    %cst_41 = arith.constant 0.318309873 : f32
    %83 = vector.broadcast %cst_41 : f32 to vector<8x128xf32>
    %84 = arith.mulf %82, %83 : vector<8x128xf32>
    %85 = math.floor %84 : vector<8x128xf32>
    %cst_42 = arith.constant 3.14159274 : f32
    %86 = vector.broadcast %cst_42 : f32 to vector<8x128xf32>
    %87 = arith.mulf %86, %85 : vector<8x128xf32>
    %88 = arith.subf %82, %87 : vector<8x128xf32>
    %cst_43 = arith.constant 1.57079637 : f32
    %89 = vector.broadcast %cst_43 : f32 to vector<8x128xf32>
    %90 = arith.subf %88, %89 : vector<8x128xf32>
    %91 = arith.mulf %90, %90 : vector<8x128xf32>
    %92 = arith.addf %15, %91 : vector<8x128xf32>
    %93 = arith.addf %29, %91 : vector<8x128xf32>
    %c2_44 = arith.constant 2 : index
    %c0_45 = arith.constant 0 : index
    %c0_46 = arith.constant 0 : index
    %94 = vector.load %arg2[%c2_44, %c0_45, %c0_46] : memref<3x8x128xf32, #tpu.memory_space<vmem>>, vector<1x8x128xf32>
    %95 = vector.shape_cast %94 : vector<1x8x128xf32> to vector<8x128xf32>
    %c0_47 = arith.constant 0 : index
    %c0_48 = arith.constant 0 : index
    %c0_49 = arith.constant 0 : index
    %96 = vector.load %arg1[%c0_47, %c0_48, %c0_49] : memref<3x8x128xf32, #tpu.memory_space<vmem>>, vector<1x8x128xf32>
    %97 = vector.shape_cast %96 : vector<1x8x128xf32> to vector<8x128xf32>
    %98 = arith.subf %97, %95 : vector<8x128xf32>
    %cst_50 = arith.constant 1.57079637 : f32
    %99 = vector.broadcast %cst_50 : f32 to vector<8x128xf32>
    %100 = arith.addf %98, %99 : vector<8x128xf32>
    %cst_51 = arith.constant 0.318309873 : f32
    %101 = vector.broadcast %cst_51 : f32 to vector<8x128xf32>
    %102 = arith.mulf %100, %101 : vector<8x128xf32>
    %103 = math.floor %102 : vector<8x128xf32>
    %cst_52 = arith.constant 3.14159274 : f32
    %104 = vector.broadcast %cst_52 : f32 to vector<8x128xf32>
    %105 = arith.mulf %104, %103 : vector<8x128xf32>
    %106 = arith.subf %100, %105 : vector<8x128xf32>
    %cst_53 = arith.constant 1.57079637 : f32
    %107 = vector.broadcast %cst_53 : f32 to vector<8x128xf32>
    %108 = arith.subf %106, %107 : vector<8x128xf32>
    %109 = arith.mulf %108, %108 : vector<8x128xf32>
    %110 = arith.addf %93, %109 : vector<8x128xf32>
    %111 = arith.addf %77, %109 : vector<8x128xf32>
    %c1_54 = arith.constant 1 : index
    %c0_55 = arith.constant 0 : index
    %c0_56 = arith.constant 0 : index
    %112 = vector.load %arg1[%c1_54, %c0_55, %c0_56] : memref<3x8x128xf32, #tpu.memory_space<vmem>>, vector<1x8x128xf32>
    %113 = vector.shape_cast %112 : vector<1x8x128xf32> to vector<8x128xf32>
    %114 = arith.subf %113, %95 : vector<8x128xf32>
    %cst_57 = arith.constant 1.57079637 : f32
    %115 = vector.broadcast %cst_57 : f32 to vector<8x128xf32>
    %116 = arith.addf %114, %115 : vector<8x128xf32>
    %cst_58 = arith.constant 0.318309873 : f32
    %117 = vector.broadcast %cst_58 : f32 to vector<8x128xf32>
    %118 = arith.mulf %116, %117 : vector<8x128xf32>
    %119 = math.floor %118 : vector<8x128xf32>
    %cst_59 = arith.constant 3.14159274 : f32
    %120 = vector.broadcast %cst_59 : f32 to vector<8x128xf32>
    %121 = arith.mulf %120, %119 : vector<8x128xf32>
    %122 = arith.subf %116, %121 : vector<8x128xf32>
    %cst_60 = arith.constant 1.57079637 : f32
    %123 = vector.broadcast %cst_60 : f32 to vector<8x128xf32>
    %124 = arith.subf %122, %123 : vector<8x128xf32>
    %125 = arith.mulf %124, %124 : vector<8x128xf32>
    %126 = arith.addf %92, %125 : vector<8x128xf32>
    %127 = arith.addf %61, %125 : vector<8x128xf32>
    %c2_61 = arith.constant 2 : index
    %c0_62 = arith.constant 0 : index
    %c0_63 = arith.constant 0 : index
    %128 = vector.load %arg1[%c2_61, %c0_62, %c0_63] : memref<3x8x128xf32, #tpu.memory_space<vmem>>, vector<1x8x128xf32>
    %129 = vector.shape_cast %128 : vector<1x8x128xf32> to vector<8x128xf32>
    %130 = arith.subf %129, %95 : vector<8x128xf32>
    %cst_64 = arith.constant 1.57079637 : f32
    %131 = vector.broadcast %cst_64 : f32 to vector<8x128xf32>
    %132 = arith.addf %130, %131 : vector<8x128xf32>
    %cst_65 = arith.constant 0.318309873 : f32
    %133 = vector.broadcast %cst_65 : f32 to vector<8x128xf32>
    %134 = arith.mulf %132, %133 : vector<8x128xf32>
    %135 = math.floor %134 : vector<8x128xf32>
    %cst_66 = arith.constant 3.14159274 : f32
    %136 = vector.broadcast %cst_66 : f32 to vector<8x128xf32>
    %137 = arith.mulf %136, %135 : vector<8x128xf32>
    %138 = arith.subf %132, %137 : vector<8x128xf32>
    %cst_67 = arith.constant 1.57079637 : f32
    %139 = vector.broadcast %cst_67 : f32 to vector<8x128xf32>
    %140 = arith.subf %138, %139 : vector<8x128xf32>
    %141 = arith.mulf %140, %140 : vector<8x128xf32>
    %142 = arith.addf %76, %141 : vector<8x128xf32>
    %143 = arith.addf %60, %141 : vector<8x128xf32>
    %144 = arith.minimumf %142, %126 : vector<8x128xf32>
    %145 = arith.minimumf %144, %143 : vector<8x128xf32>
    %146 = arith.minimumf %145, %110 : vector<8x128xf32>
    %147 = arith.minimumf %146, %127 : vector<8x128xf32>
    %148 = arith.minimumf %147, %111 : vector<8x128xf32>
    %cst_68 = arith.constant 0.333333343 : f32
    %149 = vector.broadcast %cst_68 : f32 to vector<8x128xf32>
    %150 = arith.mulf %148, %149 : vector<8x128xf32>
    %cst_69 = arith.constant dense<0.000000e+00> : vector<128xf32>
    %151 = vector.multi_reduction <add>, %150, %cst_69 [0] : vector<8x128xf32> to vector<128xf32>
    %152 = vector.shape_cast %151 : vector<128xf32> to vector<1x128xf32>
    %c0_70 = arith.constant 0 : index
    %c0_71 = arith.constant 0 : index
    %153 = vector.load %arg3[%c0_70, %c0_71] : memref<1x128xf32, #tpu.memory_space<vmem>>, vector<1x128xf32>
    tpu.vector_store %arg3[%c0_70, %c0_71], %152 {strides = array<i32>} : memref<1x128xf32, #tpu.memory_space<vmem>>, vector<1x128xf32>,
    return
  }
  func.func @transform_0(%arg0: i32) -> (i32, i32, i32) {
    %c0_i32 = arith.constant 0 : i32
    %c0_i32_0 = arith.constant 0 : i32
    %c0_i32_1 = arith.constant 0 : i32
    return %c0_i32, %arg0, %c0_i32_0 : i32, i32, i32
  }
  func.func @transform_1(%arg0: i32) -> (i32, i32, i32) {
    %c0_i32 = arith.constant 0 : i32
    %c0_i32_0 = arith.constant 0 : i32
    %c0_i32_1 = arith.constant 0 : i32
    return %c0_i32, %arg0, %c0_i32_0 : i32, i32, i32
  }
  func.func @transform_2(%arg0: i32) -> (i32, i32) {
    %c0_i32 = arith.constant 0 : i32
    %c0_i32_0 = arith.constant 0 : i32
    return %c0_i32, %arg0 : i32, i32
  }
}

</mosaic_0001>

<bundles_post_ra>
// kernel: tpu_custom_call.1
= control target key start
LH: loop header
LB: loop body
LE: loop exit
PB: predicated region body
PF: predicated region fallthrough
CT: control target
= control target key end

     0   :  { %7 = vsyncpa [#allocation3], 0  ;;  %s290_s0 = inlined_call_operand.hbm [shape: f32[3,8,128], index: 0, kind: input, shape index: {}]   ;;  %s291_s1 = inlined_call_operand.hbm [shape: f32[3,8,128], index: 1, kind: input, shape index: {}]   ;;  %s292_s2 = inlined_call_operand.hbm [shape: f32[1,128], index: 2, kind: output, shape index: {}]  }
   0x1   :  { %8 = vsyncpa [#allocation6], 0 }
   0x2   :  { %9 = vsyncpa [#allocation4], 0  ;;  %s14_s11 = sshll.u32 %s290_s0, 4  ;;  %s261_s12 = smov [#allocation2]   ;;  %s15_s11 = int_to_ptr.hbm [resolvable:$true] %s14_s11 }
   0x3   :  { %s16_s13 = sshll.u32 %s261_s12, 4  ;;  %s27_s16 = sshll.u32 %s291_s1, 4  ;;  %s17_s13 = int_to_ptr.vmem [resolvable:$true] %s16_s13  ;;  %s28_s16 = int_to_ptr.hbm [resolvable:$true] %s27_s16 }
   0x4   :  { %s262_s17 = smov 128   ;;  %s263_s18 = smov 8  }
   0x5   :  { %22 = dma.hbm_to_vmem [thread:$0]  %s15_s11, 384, %s17_s13, [#allocation3], %s262_s17, %s262_s17, %s263_s18  }
   0x6   :  { %s264_s19 = smov [#allocation5]  }
   0x7   :  { %s29_s20 = sshll.u32 %s264_s19, 4  ;;  %s30_s20 = int_to_ptr.vmem [resolvable:$true] %s29_s20 }
   0x8   :  { %35 = dma.hbm_to_vmem [thread:$0]  %s28_s16, 384, %s30_s20, [#allocation6], %s262_s17, %s262_s17, %s263_s18  }
   0x9   :  { %255 = dma.done.wait [#allocation3], 384  }
   0xa   :  { %256 = vsyncadd [#allocation3], 4294966912 }
   0xb   :  { %257 = dma.done.wait [#allocation6], 384  }
   0xc   :  { %258 = vsyncadd [#allocation6], 4294966912  ;;  %v44_v0 = vld [vmem:[#allocation5] sm:$0xff]  ;;  %v45_v1 = vld [vmem:[#allocation2] sm:$0xff]  ;;  %s265_s0 = smov [#allocation7]   ;;  %s158_s23 = sshll.u32 %s292_s2, 4  ;;  %s159_s23 = int_to_ptr.hbm [resolvable:$true] %s158_s23 }
   0xd   :  { %v55_v2 = vld [vmem:[#allocation2 + $0x8] sm:$0xff]  ;;  %v46_v3 = vsub.f32 %v45_v1, %v44_v0  ;;  %v65_v5 = vld [vmem:[#allocation2 + $0x10] sm:$0xff]  ;;  %v75_v6 = vld [vmem:[#allocation5 + $0x8] sm:$0xff]  ;;  %s156_s1 = sshll.u32 %s265_s0, 4  ;;  %s157_s1 = int_to_ptr.vmem [resolvable:$true] %s156_s1 }
   0xe   :  { %v56_v4 = vsub.f32 %v55_v2, %v44_v0  ;;  %v107_v7 = vld [vmem:[#allocation5 + $0x10] sm:$0xff]  ;;  %v66_v8 = vsub.f32 %v65_v5, %v44_v0  ;;  %v76_v9 = vsub.f32 %v45_v1, %v75_v6  ;;  %v86_v10 = vsub.f32 %v55_v2, %v75_v6 }
   0xf   :  { %v96_v11 = vsub.f32 %v65_v5, %v75_v6  ;;  %v47_v12 = vadd.f32 1.5707964, %v46_v3  ;;  %v108_v14 = vsub.f32 %v45_v1, %v107_v7  ;;  %v118_v18 = vsub.f32 %v55_v2, %v107_v7 }
  0x10   :  { %v57_v13 = vadd.f32 1.5707964, %v56_v4  ;;  %v67_v15 = vadd.f32 1.5707964, %v66_v8  ;;  %v77_v16 = vadd.f32 1.5707964, %v76_v9  ;;  %v128_v42 = vsub.f32 %v65_v5, %v107_v7 }
  0x11   :  { %v87_v17 = vadd.f32 1.5707964, %v86_v10  ;;  %v48_v19 = vmul.f32 0.31830987, %v47_v12  ;;  %v97_v21 = vadd.f32 1.5707964, %v96_v11 }
  0x12   :  { %v58_v20 = vmul.f32 0.31830987, %v57_v13  ;;  %v68_v22 = vmul.f32 0.31830987, %v67_v15  ;;  %v78_v23 = vmul.f32 0.31830987, %v77_v16 }
  0x13   :  { %v88_v24 = vmul.f32 0.31830987, %v87_v17  ;;  %v49_v25 = vfloor.f32 %v48_v19  ;;  %v98_v27 = vmul.f32 0.31830987, %v97_v21  ;;  %v109_v28 = vadd.f32 1.5707964, %v108_v14 }
  0x14   :  { %v59_v26 = vfloor.f32 %v58_v20  ;;  %v79_v29 = vfloor.f32 %v78_v23  ;;  %v119_v31 = vadd.f32 1.5707964, %v118_v18  ;;  %v69_v36 = vfloor.f32 %v68_v22 }
  0x15   :  { %v89_v30 = vfloor.f32 %v88_v24  ;;  %v50_v32 = vmul.f32 3.1415927, %v49_v25  ;;  %v99_v33 = vfloor.f32 %v98_v27  ;;  %v110_v34 = vmul.f32 0.31830987, %v109_v28 }
  0x16   :  { %v60_v35 = vmul.f32 3.1415927, %v59_v26  ;;  %v80_v38 = vmul.f32 3.1415927, %v79_v29  ;;  %v120_v40 = vmul.f32 0.31830987, %v119_v31 }
  0x17   :  { %v100_v37 = vmul.f32 3.1415927, %v99_v33  ;;  %v90_v39 = vmul.f32 3.1415927, %v89_v30  ;;  %v51_v41 = vsub.f32 %v47_v12, %v50_v32  ;;  %v111_v44 = vfloor.f32 %v110_v34 }
  0x18   :  { %v121_v45 = vfloor.f32 %v120_v40  ;;  %v61_v46 = vsub.f32 %v57_v13, %v60_v35  ;;  %v70_v47 = vmul.f32 3.1415927, %v69_v36  ;;  %v81_v48 = vsub.f32 %v77_v16, %v80_v38 }
  0x19   :  { %v101_v43 = vsub.f32 %v97_v21, %v100_v37  ;;  %v91_v49 = vsub.f32 %v87_v17, %v90_v39  ;;  %v169_v51 = vadd.f32 -1.5707964, %v51_v41  ;;  %v129_v52 = vadd.f32 1.5707964, %v128_v42 }
  0x1a   :  { %v122_v50 = vmul.f32 3.1415927, %v121_v45  ;;  %v112_v54 = vmul.f32 3.1415927, %v111_v44  ;;  %v170_v55 = vadd.f32 -1.5707964, %v61_v46  ;;  %v71_v56 = vsub.f32 %v67_v15, %v70_v47 }
  0x1b   :  { %v174_v53 = vadd.f32 -1.5707964, %v101_v43  ;;  %v172_v58 = vadd.f32 -1.5707964, %v81_v48  ;;  %v173_v59 = vadd.f32 -1.5707964, %v91_v49  ;;  %v53_v61 = vmul.f32 %v169_v51, %v169_v51 }
  0x1c   :  { %v123_v57 = vsub.f32 %v119_v31, %v122_v50  ;;  %v130_v60 = vmul.f32 0.31830987, %v129_v52  ;;  %v113_v63 = vsub.f32 %v109_v28, %v112_v54  ;;  %v171_v2 = vadd.f32 -1.5707964, %v71_v56 }
  0x1d   :  { %v103_v62 = vmul.f32 %v174_v53, %v174_v53  ;;  %v63_v3 = vmul.f32 %v170_v55, %v170_v55  ;;  %v83_v4 = vmul.f32 %v172_v58, %v172_v58  ;;  %v93_v5 = vmul.f32 %v173_v59, %v173_v59 }
  0x1e   :  { %v176_v0 = vadd.f32 -1.5707964, %v123_v57  ;;  %v131_v1 = vfloor.f32 %v130_v60  ;;  %v175_v8 = vadd.f32 -1.5707964, %v113_v63  ;;  %v73_v11 = vmul.f32 %v171_v2, %v171_v2 }
  0x1f   :  { %v104_v7 = vadd.f32 %v103_v62, %v53_v61  ;;  %v84_v12 = vadd.f32 %v83_v4, %v63_v3  ;;  %v94_v13 = vadd.f32 %v93_v5, %v53_v61  ;;  %v105_v15 = vadd.f32 %v103_v62, %v63_v3 }
  0x20   :  { %v132_v6 = vmul.f32 3.1415927, %v131_v1  ;;  %v125_v9 = vmul.f32 %v176_v0, %v176_v0  ;;  %v115_v16 = vmul.f32 %v175_v8, %v175_v8  ;;  %v85_v19 = vadd.f32 %v83_v4, %v73_v11 }
  0x21   :  { %v95_v22 = vadd.f32 %v93_v5, %v73_v11 }
  0x22   :  { %v133_v10 = vsub.f32 %v129_v52, %v132_v6  ;;  %v126_v17 = vadd.f32 %v125_v9, %v104_v7  ;;  %v116_v23 = vadd.f32 %v115_v16, %v105_v15  ;;  %v127_v25 = vadd.f32 %v125_v9, %v85_v19 }
  0x23   :  { %v117_v27 = vadd.f32 %v115_v16, %v95_v22 }
  0x24   :  { %v177_v14 = vadd.f32 -1.5707964, %v133_v10 }
  0x26   :  { %v135_v18 = vmul.f32 %v177_v14, %v177_v14 }
  0x28   :  { %v136_v20 = vadd.f32 %v135_v18, %v94_v13  ;;  %v137_v21 = vadd.f32 %v135_v18, %v84_v12 }
  0x2a   :  { %v138_v24 = vmin.f32 %v136_v20, %v126_v17 }
  0x2c   :  { %v139_v26 = vmin.f32 %v138_v24, %v137_v21 }
  0x2e   :  { %v140_v28 = vmin.f32 %v139_v26, %v116_v23 }
  0x30   :  { %v141_v29 = vmin.f32 %v140_v28, %v127_v25 }
  0x32   :  { %v142_v30 = vmin.f32 %v141_v29, %v117_v27 }
  0x34   :  { %v143_v31 = vmul.f32 0.33333334, %v142_v30 }
  0x36   :  { %v144_v32 = vrot.slane %v143_v31, 4 }
  0x38   :  { %v145_v33 = vadd.f32 %v144_v32, %v143_v31 }
  0x3a   :  { %v146_v34 = vrot.slane %v145_v33, 2 }
  0x3c   :  { %v147_v35 = vadd.f32 %v146_v34, %v145_v33 }
  0x3e   :  { %v148_v36 = vrot.slane %v147_v35, 1 }
  0x40   :  { %v149_v37 = vadd.f32 %v148_v36, %v147_v35 }
  0x42   :  { %150 = vst [vmem:[#allocation7] sm:$0x1] %v149_v37 }
  0x43   :  { %161 = dma.vmem_to_hbm [thread:$0]  %s157_s1, 16, %s159_s23, [#allocation4]  }
  0x44   :  { %259 = dma.done.wait [#allocation4], 16  }
  0x45   :  { %260 = vsyncadd [#allocation4], 4294967280 }
  0x46   :  { %166 = vsyncpa [#allocation3], 1 }
  0x47   :  { %167 = vsyncpa [#allocation6], 1 }
  0x48   :  { %168 = vsyncpa [#allocation4], 1 }

</bundles_post_ra>
